<compile_context>
chip_gen: v7x
topology: tpu7x:2x2x1
jax: 0.10.0
libtpu: 0.0.40
codegen_flags: <defaults>
</compile_context>

<pallas_src>
import functools

import jax
import jax.numpy as jnp
from jax.experimental import pallas as pl
from jax.experimental.pallas import tpu as pltpu

_LANE_W = 128          # lane-dense last dim (data is contiguous, so DMA slabs
                       # are identical to a wider lane choice)
_MAX_BLOCK_ROWS = 4096  # 4096 * 128 * 4 B = 2 MiB per array per grid step


def _qmul_math(x, y, scale, zero_point, qmin, qmax):
    """Shared quantize->mul->requant->dequantize math (f32 in, f32 out)."""
    inv_s = 1.0 / scale
    lo = qmin - zero_point
    hi = qmax - zero_point
    # quantize_per_tensor with zero_point folded into the clip bounds (exact):
    # q1 == (torch quantized value) - zero_point
    q1 = jnp.clip(jnp.round(x * inv_s), lo, hi)
    q2 = jnp.clip(jnp.round(y * inv_s), lo, hi)
    # quantized.mul: dequantize each operand, multiply in the real domain
    # (torch's op order kept so requant ties round the same way).
    prod = (q1 * scale) * (q2 * scale)
    # requantize + dequantize
    qo = jnp.clip(jnp.round(prod * inv_s), lo, hi)
    return qo * scale


def _qmul_kernel(x_ref, y_ref, o_ref, *, scale, zero_point, qmin, qmax):
    o_ref[...] = _qmul_math(x_ref[...], y_ref[...], scale, zero_point, qmin, qmax)


def _pick_block_rows(rows):
    """Multiple of 8 (or full extent), sized for >=2-4 grid steps and <=2 MiB."""
    if rows <= 8:
        return rows                      # full extent: exempt from the (8,128) rule
    target = pl.cdiv(rows, 4)            # aim for >=4 blocks (v7x has 2 TensorCores)
    return min(_MAX_BLOCK_ROWS, max(8, ((target + 7) // 8) * 8))


def _run_pallas(xm, ym, rows, kernel):
    br = _pick_block_rows(rows)
    grid = (pl.cdiv(rows, br),)          # trailing partial block handled by masking
    return pl.pallas_call(
        kernel,
        out_shape=jax.ShapeDtypeStruct((rows, _LANE_W), jnp.float32),
        grid=grid,
        in_specs=[
            pl.BlockSpec((br, _LANE_W), lambda i: (i, 0)),
            pl.BlockSpec((br, _LANE_W), lambda i: (i, 0)),
        ],
        out_specs=pl.BlockSpec((br, _LANE_W), lambda i: (i, 0)),
        compiler_params=pltpu.CompilerParams(
            dimension_semantics=("parallel",),
            vmem_limit_bytes=32 * 1024 * 1024,
        ),
    )(xm, ym)


def quantized_mul(x, y, scale, zero_point, dtype="quint8"):
    """Elementwise quantized multiply + dequantize (torch.ops.quantized.mul)."""
    assert x.shape == y.shape, "broadcasting not used by the reference test"
    if dtype == "quint8":
        qmin, qmax = 0.0, 255.0
    elif dtype == "qint8":
        qmin, qmax = -128.0, 127.0
    else:
        raise ValueError(f"unsupported quantized dtype: {dtype}")

    scale = float(scale)
    zero_point = float(zero_point)
    orig_shape = x.shape
    n = x.size

    xf = x.reshape(-1).astype(jnp.float32)   # free reshape; astype is a no-op for f32
    yf = y.reshape(-1).astype(jnp.float32)

    kernel = functools.partial(
        _qmul_kernel, scale=scale, zero_point=zero_point, qmin=qmin, qmax=qmax)

    rows = n // _LANE_W
    rem = n - rows * _LANE_W

    if rem == 0 and rows > 0:
        # Fully aligned: free reshape, no pad, no slice.
        out = _run_pallas(xf.reshape(rows, _LANE_W),
                          yf.reshape(rows, _LANE_W), rows, kernel).reshape(-1)
    elif rows == 0:
        # Tiny input (< 128 elements): XLA-fused elementwise is already optimal.
        out = _qmul_math(xf, yf, scale, zero_point, qmin, qmax)
    else:
        # Unaligned: aligned prefix through the kernel, <128-element tail via
        # plain fused jnp.  Avoids the full-array pad + output slice copies.
        n_main = rows * _LANE_W
        main = _run_pallas(xf[:n_main].reshape(rows, _LANE_W),
                           yf[:n_main].reshape(rows, _LANE_W), rows, kernel).reshape(-1)
        tail = _qmul_math(xf[n_main:], yf[n_main:], scale, zero_point, qmin, qmax)
        out = jnp.concatenate([main, tail])

    return out.reshape(orig_shape)


if __name__ == "__main__":
    key = jax.random.PRNGKey(0)
    k1, k2 = jax.random.split(key)

    # Small NCHW-like shapes, matching the test's elementwise inputs.
    shape = (2, 4, 16, 16)
    x = jax.random.uniform(k1, shape, dtype=jnp.float32) * 2.0
    y = jax.random.uniform(k2, shape, dtype=jnp.float32) * 2.0

    scale = 0.21
    zero_point = 1
    qdtype = "quint8"  # torch.quint8 -> [0, 255]

    out = quantized_mul(x, y, scale, zero_point, qdtype)
    out = jax.block_until_ready(out)

    ref = _qmul_math(x.astype(jnp.float32), y.astype(jnp.float32),
                     float(scale), float(zero_point), 0.0, 255.0)
    assert out.shape == shape
    assert jnp.max(jnp.abs(out - ref)) < 1e-5

    print("KERNEL_OK")
</pallas_src>

<mosaic_0001>
module attributes {stable_mosaic.version = 11 : i64} {
  func.func @_qmul_kernel(%arg0: i32, %arg1: memref<8x128xf32, #tpu.memory_space<vmem>>, %arg2: memref<8x128xf32, #tpu.memory_space<vmem>>, %arg3: memref<8x128xf32, #tpu.memory_space<vmem>>) attributes {dimension_semantics = [#tpu.dimension_semantics<parallel>], iteration_bounds = array<i64: 2>, scalar_prefetch = 0 : i64, scratch_operands = 0 : i64, tpu.core_type = #tpu.core_type<tc>, window_params = [{transform_indices = @transform_0, window_bounds = array<i64: 8, 128>}, {transform_indices = @transform_1, window_bounds = array<i64: 8, 128>}, {transform_indices = @transform_2, window_bounds = array<i64: 8, 128>}]} {
    %c0 = arith.constant 0 : index
    %c0_0 = arith.constant 0 : index
    %0 = vector.load %arg1[%c0, %c0_0] : memref<8x128xf32, #tpu.memory_space<vmem>>, vector<8x128xf32>
    %c0_1 = arith.constant 0 : index
    %c0_2 = arith.constant 0 : index
    %1 = vector.load %arg2[%c0_1, %c0_2] : memref<8x128xf32, #tpu.memory_space<vmem>>, vector<8x128xf32>
    %cst = arith.constant 4.76190472 : f32
    %2 = vector.broadcast %cst : f32 to vector<8x128xf32>
    %3 = arith.mulf %0, %2 : vector<8x128xf32>
    %4 = math.roundeven %3 : vector<8x128xf32>
    %cst_3 = arith.constant -1.000000e+00 : f32
    %cst_4 = arith.constant 2.540000e+02 : f32
    %5 = vector.broadcast %cst_3 : f32 to vector<8x128xf32>
    %6 = arith.maximumf %5, %4 : vector<8x128xf32>
    %7 = vector.broadcast %cst_4 : f32 to vector<8x128xf32>
    %8 = arith.minimumf %7, %6 : vector<8x128xf32>
    %cst_5 = arith.constant 4.76190472 : f32
    %9 = vector.broadcast %cst_5 : f32 to vector<8x128xf32>
    %10 = arith.mulf %1, %9 : vector<8x128xf32>
    %11 = math.roundeven %10 : vector<8x128xf32>
    %cst_6 = arith.constant -1.000000e+00 : f32
    %cst_7 = arith.constant 2.540000e+02 : f32
    %12 = vector.broadcast %cst_6 : f32 to vector<8x128xf32>
    %13 = arith.maximumf %12, %11 : vector<8x128xf32>
    %14 = vector.broadcast %cst_7 : f32 to vector<8x128xf32>
    %15 = arith.minimumf %14, %13 : vector<8x128xf32>
    %cst_8 = arith.constant 2.100000e-01 : f32
    %16 = vector.broadcast %cst_8 : f32 to vector<8x128xf32>
    %17 = arith.mulf %8, %16 : vector<8x128xf32>
    %cst_9 = arith.constant 2.100000e-01 : f32
    %18 = vector.broadcast %cst_9 : f32 to vector<8x128xf32>
    %19 = arith.mulf %15, %18 : vector<8x128xf32>
    %20 = arith.mulf %17, %19 : vector<8x128xf32>
    %cst_10 = arith.constant 4.76190472 : f32
    %21 = vector.broadcast %cst_10 : f32 to vector<8x128xf32>
    %22 = arith.mulf %20, %21 : vector<8x128xf32>
    %23 = math.roundeven %22 : vector<8x128xf32>
    %cst_11 = arith.constant -1.000000e+00 : f32
    %cst_12 = arith.constant 2.540000e+02 : f32
    %24 = vector.broadcast %cst_11 : f32 to vector<8x128xf32>
    %25 = arith.maximumf %24, %23 : vector<8x128xf32>
    %26 = vector.broadcast %cst_12 : f32 to vector<8x128xf32>
    %27 = arith.minimumf %26, %25 : vector<8x128xf32>
    %cst_13 = arith.constant 2.100000e-01 : f32
    %28 = vector.broadcast %cst_13 : f32 to vector<8x128xf32>
    %29 = arith.mulf %27, %28 : vector<8x128xf32>
    %c0_14 = arith.constant 0 : index
    %c0_15 = arith.constant 0 : index
    %30 = vector.load %arg3[%c0_14, %c0_15] : memref<8x128xf32, #tpu.memory_space<vmem>>, vector<8x128xf32>
    tpu.vector_store %arg3[%c0_14, %c0_15], %29 {strides = array<i32>} : memref<8x128xf32, #tpu.memory_space<vmem>>, vector<8x128xf32>,
    return
  }
  func.func @transform_0(%arg0: i32) -> (i32, i32) {
    %c0_i32 = arith.constant 0 : i32
    %c0_i32_0 = arith.constant 0 : i32
    return %arg0, %c0_i32 : i32, i32
  }
  func.func @transform_1(%arg0: i32) -> (i32, i32) {
    %c0_i32 = arith.constant 0 : i32
    %c0_i32_0 = arith.constant 0 : i32
    return %arg0, %c0_i32 : i32, i32
  }
  func.func @transform_2(%arg0: i32) -> (i32, i32) {
    %c0_i32 = arith.constant 0 : i32
    %c0_i32_0 = arith.constant 0 : i32
    return %arg0, %c0_i32 : i32, i32
  }
}

</mosaic_0001>

<bundles_post_ra>
// kernel: tpu_custom_call.1
= control target key start
LH: loop header
LB: loop body
LE: loop exit
PB: predicated region body
PF: predicated region fallthrough
CT: control target
= control target key end

     0   :  { %7 = vsyncpa [#allocation3], 0  ;;  %s755_s0 = inlined_call_operand.hbm [shape: f32[16,128], index: 0, kind: input, shape index: {}]   ;;  %s756_s1 = inlined_call_operand.hbm [shape: f32[16,128], index: 1, kind: input, shape index: {}]   ;;  %s757_s2 = inlined_call_operand.hbm [shape: f32[16,128], index: 2, kind: output, shape index: {}]  }
   0x1   :  { %9 = vsyncpa [#allocation3 + $0x1], 0 }
   0x2   :  { %10 = vsyncpa [#allocation6], 0 }
   0x3   :  { %12 = vsyncpa [#allocation6 + $0x1], 0 }
   0x4   :  { %13 = vsyncpa [#allocation4], 0 }
   0x5   :  { %15 = vsyncpa [#allocation4 + $0x1], 0  ;;  %s541_s9 = smov 0   ;;  %s543_s10 = smov 0  }
   0x6   :  { %s545_s11 = smov 0   ;;  %s547_s12 = smov 0  }
   0x7 LB: > { %s562_s13 = sadd.s32 4294967295, %s521_s12   ;;  %s322_s14 = sadd.s32 4294967294, %s521_s12   ;;  %s521_s12 = sphi %s547_s12, %s776_s12   ;;  %s517_s11 = sphi %s545_s11, %s775_s11   ;;  %s513_s10 = sphi %s543_s10, %s774_s10   ;;  %s509_s9 = sphi %s541_s9, %s773_s9  }
   0x8   : > { %s566_s15 = sadd.s32 1, %s521_s12   ;;  %s28_s16 = sadd.s32 1, %s517_s11 }
   0x9   : > { %s25_s17 = ssub.s32 %s521_s12, %s566_s15  ;;  %p35_p0 = scmp.ne.s32.totalorder %s517_s11, %s513_s10 }
   0xa   : > { %p26_p1 = scmp.eq.s32.totalorder %s25_s17, 0  ;;  %p36_p2 = scmp.eq.s32.totalorder %s521_s12, 0 }
   0xb   : > { %p41_p3 = scmp.ne.s32.totalorder %s513_s10, %s509_s9  ;;  %p42_p4 = scmp.eq.s32.totalorder %s562_s13, 0 }
   0xc   : > { %s578_s18 = scalar_select %p26_p1, %s517_s11, %s28_s16  }
   0xd   : > { %p580_p5 = por %p36_p2, %p35_p0  ;;  %p584_p6 = por %p42_p4, %p41_p3 }
   0xe   : > { %p91_p7 = scmp.eq.s32.totalorder %s562_s13, 1  ;;  %p97_p8 = scmp.eq.s32.totalorder %s322_s14, 1 }
   0xf   : > { %s761_s20 = scalar_select %p584_p6, 1, 0 }
  0x10   : > { %p357_p10 = scmp.lt.s32.totalorder %s521_s12, 2  ;;  %p591_p11 = por %p91_p7, %p35_p0 }
  0x11   : > { %p595_p12 = por %p97_p8, %p41_p3  ;;  %s600_s23 = sand.u32 1, %s517_s11  }
  0x12   : > { %s762_s21 = scalar_select %p591_p11, 1, 0 }
  0x13   : > { %s763_s22 = scalar_select %p595_p12, 1, 0 }
  0x14   : > { %s326_s24 = sshll.u32 %s521_s12, 7  ;;  %s325_s25 = sshll.u32 %s600_s23, 3 }
  0x15   : > { %s609_s28 = scalar_lea.hbm %s755_s0, %s326_s24  ;;  %s121_s29 = scalar_lea.vmem [#allocation2], %s325_s25 }
  0x16   : > { %s128_s30 = sshll.u32 %s121_s29, 4  ;;  %p615_p13 = pnand %p357_p10, %p580_p5  ;;  %s619_s30 = int_to_ptr.vmem [resolvable:$true] %s128_s30 }
  0x17   : > { %s118_s4 = scalar_lea.sflag [#allocation3], %s600_s23  ;;  %s391_s5 = scalar_lea.hbm %s609_s28, 128 }
  0x18   : > { %p392_p2 = scmp.ne.s32.totalorder %s609_s28, %s391_s5  ;;  %p393_p3 = pneg %p615_p13 }
  0x19   : > { %s396_s8 = scalar_lea.hbm %s755_s0, 256  ;;  %p397_p5 = scmp.lt.u32.totalorder %s609_s28, %s755_s0 }
  0x1a   : > { %p394_p4 = pnand %p393_p3, %p392_p2  ;;  %p398_p8 = scmp.lt.u32.totalorder %s396_s8, %s391_s5 }
  0x1b   : > { %p400_p9 = scmp.lt.u32.totalorder %s391_s5, %s609_s28 }
  0x1c   : > { %p395_p7 = pneg %p394_p4  ;;  %p399_p10 = por %p398_p8, %p397_p5 }
  0x1e   : > { %p401_p0 = por %p400_p9, %p399_p10 }
  0x20   : > { %p402_p1 = pnand %p401_p0, %p395_p7 }
  0x22   : > { %405 = shalt.err (!%p402_p1)
}
  0x23   : > { %s406_s17 = scalar_lea.vmem %s619_s30, 128  ;;  %s523_s19 = smov [#allocation2]  }
  0x24   : > { %p407_p2 = scmp.ne.s32.totalorder %s619_s30, %s406_s17  ;;  %s411_s26 = sshll.u32 %s523_s19, 4  ;;  %s412_s26 = int_to_ptr.vmem [resolvable:$false] %s411_s26 }
  0x25   : > { %s413_s27 = scalar_lea.vmem %s412_s26, 256  ;;  %p414_p11 = scmp.lt.s32.totalorder %s619_s30, %s412_s26 }
  0x26   : > { %p409_p4 = pnand %p407_p2, %p393_p3  ;;  %p415_p5 = scmp.lt.s32.totalorder %s413_s27, %s406_s17 }
  0x28   : > { %p410_p12 = pneg %p409_p4  ;;  %p416_p8 = por %p415_p5, %p414_p11 }
  0x2a   : > { %p417_p9 = pnand %p416_p8, %p410_p12 }
  0x2c   : > { %420 = shalt.err (!%p417_p9)
}
  0x2d   : > { %349 = dma.hbm_to_vmem [thread:$0]  (!%p615_p13), %s609_s28, 128, %s619_s30, %s118_s4  }
  0x2e   : > { %p765_p0 = scmp.lt.s32.totalorder %s521_s12, 3  ;;  %p766_p1 = scmp.ge.s32.totalorder %s521_s12, 1 }
  0x2f   : > { %s662_s7 = scalar_lea.hbm %s756_s1, %s326_s24  ;;  %s139_s8 = scalar_lea.vmem [#allocation5], %s325_s25 }
  0x30   : > { %p653_p7 = pnand %p766_p1, %p765_p0  ;;  %s146_s14 = sshll.u32 %s139_s8, 4  ;;  %s147_s14 = int_to_ptr.vmem [resolvable:$true] %s146_s14 }
  0x31   : > { %s136_s28 = scalar_lea.sflag [#allocation6], %s600_s23  ;;  %s421_s30 = scalar_lea.hbm %s662_s7, 128 }
  0x32   : > { %s767_s29 = scalar_select %p653_p7, 1, 0 }
  0x33   : > { %p422_p11 = scmp.ne.s32.totalorder %s662_s7, %s421_s30  ;;  %s426_s24 = scalar_lea.hbm %s756_s1, 256 }
  0x34   : > { %p427_p2 = scmp.lt.u32.totalorder %s662_s7, %s756_s1  ;;  %p428_p4 = scmp.lt.u32.totalorder %s426_s24, %s421_s30 }
  0x35   : > { %p424_p12 = pnand %p422_p11, %p393_p3  ;;  %p430_p8 = scmp.lt.u32.totalorder %s421_s30, %s662_s7 }
  0x36   : > { %p429_p5 = por %p428_p4, %p427_p2 }
  0x37   : > { %p425_p10 = pneg %p424_p12 }
  0x38   : > { %p431_p9 = por %p430_p8, %p429_p5 }
  0x3a   : > { %p432_p0 = pnand %p431_p9, %p425_p10 }
  0x3c   : > { %435 = shalt.err (!%p432_p0)
}
  0x3d   : > { %s436_s23 = scalar_lea.vmem %s147_s14, 128  ;;  %s524_s25 = smov [#allocation5]  }
  0x3e   : > { %p437_p1 = scmp.ne.s32.totalorder %s147_s14, %s436_s23  ;;  %s441_s26 = sshll.u32 %s524_s25, 4  ;;  %s442_s26 = int_to_ptr.vmem [resolvable:$false] %s441_s26 }
  0x3f   : > { %s443_s27 = scalar_lea.vmem %s442_s26, 256  ;;  %p444_p6 = scmp.lt.s32.totalorder %s147_s14, %s442_s26 }
  0x40   : > { %p439_p11 = pnand %p437_p1, %p393_p3  ;;  %p445_p7 = scmp.lt.s32.totalorder %s443_s27, %s436_s23 }
  0x42   : > { %p440_p12 = pneg %p439_p11  ;;  %p446_p2 = por %p445_p7, %p444_p6 }
  0x44   : > { %p447_p4 = pnand %p446_p2, %p440_p12 }
  0x46   : > { %450 = shalt.err (!%p447_p4)
}
  0x47   : > { %352 = dma.hbm_to_vmem [thread:$0]  (!%p615_p13), %s662_s7, 128, %s147_s14, %s136_s28  }
  0x48   : > { %p768_p10 = scmp.ne.s32.totalorder %s767_s29, 0 }
  0x49   : > { %s689_s5 = sand.u32 (!%p768_p10), 1, %s513_s10   ;;  %p769_p6 = scmp.ne.s32.totalorder (!%p768_p10), %s761_s20, 0 }
  0x4a   : > { %155 = sbr.rel (%p768_p10) target bundleno = 121 (0x79), region = 28  ;;  %s692_s6 = sshll.u32 (!%p768_p10), %s689_s5, 3 }
  0x4b   : > { %s158_s8 = scalar_lea.sflag (!%p768_p10), [#allocation3], %s689_s5  ;;  %s161_s30 = scalar_lea.vmem (!%p768_p10), [#allocation2], %s692_s6 }
  0x51   : > { %496 = dma.done.wait (%p769_p6), %s158_s8, 128  }
  0x52   : > { %498 = vsyncadd (%p769_p6), %s158_s8, 4294967168  ;;  %s167_s3 = scalar_lea.sflag [#allocation6], %s689_s5  ;;  %s170_s29 = scalar_lea.vmem [#allocation5], %s692_s6 }
  0x53   : > { %500 = dma.done.wait (%p769_p6), %s167_s3, 128  }
  0x54   : > { %502 = vsyncadd (%p769_p6), %s167_s3, 4294967168  ;;  %v196_v0 = vld [vmem:[%s161_s30] sm:$0xff]  ;;  %v197_v1 = vld [vmem:[%s170_s29] sm:$0xff]  ;;  %s195_s20 = scalar_lea.vmem [#allocation7], %s692_s6  ;;  %s334_s14 = sshll.u32 %s562_s13, 7 }
  0x55   : > { %v198_v2 = vmul.f32 4.7619047, %v196_v0  ;;  %v202_v3 = vmul.f32 4.7619047, %v197_v1  ;;  %s229_s7 = sshll.u32 %s195_s20, 4  ;;  %s713_s16 = scalar_lea.hbm %s757_s2, %s334_s14  ;;  %s708_s7 = int_to_ptr.vmem [resolvable:$true] %s229_s7 }
  0x56   : > { %s216_s24 = scalar_lea.sflag [#allocation4], %s689_s5  ;;  %s451_s17 = scalar_lea.vmem %s708_s7, 128 }
  0x57   : > { %v337_v4 = vround.rtne.f32 %v198_v2  ;;  %v338_v5 = vround.rtne.f32 %v202_v3  ;;  %p452_p13 = scmp.ne.s32.totalorder %s708_s7, %s451_s17  ;;  %p770_p3 = scmp.ne.s32.totalorder %s762_s21, 0 }
  0x58   : > { %s525_s13 = smov [#allocation7]  }
  0x59   : > { %v200_v6 = vmax.f32 %v337_v4, -1.0  ;;  %v204_v7 = vmax.f32 %v338_v5, -1.0  ;;  %p453_p7 = pnand %p452_p13, %p770_p3  ;;  %s455_s19 = sshll.u32 %s525_s13, 4  ;;  %s456_s19 = int_to_ptr.vmem [resolvable:$false] %s455_s19 }
  0x5a   : > { %s457_s23 = scalar_lea.vmem %s456_s19, 256  ;;  %p458_p8 = scmp.lt.s32.totalorder %s708_s7, %s456_s19 }
  0x5b   : > { %v201_v8 = vmin.f32 %v200_v6, 254.0  ;;  %v205_v9 = vmin.f32 %v204_v7, 254.0  ;;  %p454_p5 = pneg %p453_p7  ;;  %p459_p9 = scmp.lt.s32.totalorder %s457_s23, %s451_s17 }
  0x5d   : > { %v206_v10 = vmul.f32 0.21, %v201_v8  ;;  %v207_v11 = vmul.f32 0.21, %v205_v9  ;;  %p460_p0 = por %p459_p9, %p458_p8 }
  0x5f   : > { %v208_v12 = vmul.f32 %v207_v11, %v206_v10  ;;  %p461_p1 = pnand %p460_p0, %p454_p5 }
  0x61   : > { %v209_v13 = vmul.f32 4.7619047, %v208_v12 }
  0x63   : > { %v339_v14 = vround.rtne.f32 %v209_v13 }
  0x65   : > { %v211_v15 = vmax.f32 %v339_v14, -1.0 }
  0x67   : > { %v212_v16 = vmin.f32 %v211_v15, 254.0 }
  0x69   : > { %v213_v17 = vmul.f32 0.21, %v212_v16 }
  0x6b   : > { %214 = vst [vmem:[%s195_s20] sm:$0xff] %v213_v17 }
  0x6c   : > { %464 = shalt.err (!%p461_p1)
}
  0x6d   : > { %s465_s25 = scalar_lea.hbm %s713_s16, 128  ;;  %s469_s5 = scalar_lea.hbm %s757_s2, 256 }
  0x6e   : > { %p466_p11 = scmp.ne.s32.totalorder %s713_s16, %s465_s25  ;;  %p470_p4 = scmp.lt.u32.totalorder %s713_s16, %s757_s2 }
  0x6f   : > { %p471_p10 = scmp.lt.u32.totalorder %s469_s5, %s465_s25  ;;  %p473_p13 = scmp.lt.u32.totalorder %s465_s25, %s713_s16 }
  0x70   : > { %p467_p12 = pnand %p466_p11, %p770_p3 }
  0x71   : > { %p472_p6 = por %p471_p10, %p470_p4 }
  0x72   : > { %p468_p2 = pneg %p467_p12 }
  0x73   : > { %p474_p7 = por %p473_p13, %p472_p6 }
  0x75   : > { %p475_p5 = pnand %p474_p7, %p468_p2 }
  0x77   : > { %478 = shalt.err (!%p475_p5)
}
  0x78   : > { %344 = dma.vmem_to_hbm [thread:$0]  (%p770_p3), %s708_s7, 128, %s713_s16, %s216_s24  }
  0x79 PF: > { %s241_s30 = sand.u32 1, %s509_s9   ;;  %p771_p8 = scmp.ne.s32.totalorder %s763_s22, 0 }
  0x7a   : > { %p772_p9 = scmp.ge.s32.totalorder %s521_s12, 2  ;;  %s242_s3 = scalar_lea.sflag [#allocation4], %s241_s30 }
  0x7c   : > { %p354_p0 = pnand %p772_p9, %p771_p8 }
  0x7e   : > { %504 = dma.done.wait (!%p354_p0), %s242_s3, 128  }
  0x7f   : > { %506 = vsyncadd (!%p354_p0), %s242_s3, 4294967168  ;;  %p18_p1 = scmp.ge.s32.totalorder %s566_s15, 4   ;;  %s773_s9 = smov %s513_s10 }
  0x80   : > { %s774_s10 = smov %s517_s11  ;;  %s775_s11 = smov %s578_s18 }
  0x81   : > { %s776_s12 = smov %s566_s15  ;;  %20 = sbr.rel (!%p18_p1) target bundleno = 7 (0x7), region = 86 }
  0x88   :  { %247 = vsyncpa [#allocation3], 1 }
  0x89   :  { %249 = vsyncpa [#allocation3 + $0x1], 1 }
  0x8a   :  { %250 = vsyncpa [#allocation6], 1 }
  0x8b   :  { %252 = vsyncpa [#allocation6 + $0x1], 1 }
  0x8c   :  { %253 = vsyncpa [#allocation4], 1 }
  0x8d   :  { %255 = vsyncpa [#allocation4 + $0x1], 1 }

</bundles_post_ra>
